<compile_context>
chip_gen: v7x
topology: tpu7x:2x2x1
jax: 0.10.0
libtpu: 0.0.40
codegen_flags: <defaults>
</compile_context>

<pallas_src>
import functools

import jax
import jax.numpy as jnp
import numpy as np
from jax import lax
from jax.experimental import pallas as pl
from jax.experimental.pallas import tpu as pltpu


def _round_up(n, m):
    return ((n + m - 1) // m) * m


def mlp_kernel(x_ref, w1_ref, b1_ref, wh_ref, bh_ref, o_ref, *, layer_N, use_relu):
    """One row-tile of the MLP: (tm, Din_pad) bf16 -> (tm, H) f32."""
    act = (lambda v: jnp.maximum(v, 0.0)) if use_relu else jnp.tanh

    # fc1: bf16 operands straight from the (already bf16) input tile, f32 MXU
    # accumulation, f32 bias + activation epilogue.
    h = jnp.dot(x_ref[...], w1_ref[...],
                preferred_element_type=jnp.float32) + b1_ref[...]
    h = act(h)                                          # (tm, H) f32

    if layer_N <= 8:
        # Small stacks: static unroll (trace-time constant trip count).
        for l in range(layer_N):
            h = jnp.dot(h.astype(jnp.bfloat16), wh_ref[l],
                        preferred_element_type=jnp.float32) + bh_ref[l]
            h = act(h)
    else:
        # Deep stacks: fori_loop keeps only one layer's temporaries live.
        def body(l, hc):
            hn = jnp.dot(hc.astype(jnp.bfloat16), wh_ref[l],
                         preferred_element_type=jnp.float32) + bh_ref[l]
            return act(hn)
        h = lax.fori_loop(0, layer_N, body, h)

    # TODO(synk): optional bf16 bias/act epilogue (v6e/v7x VPU win) is omitted
    # on purpose — it compounds error across layer_N tanh layers.
    o_ref[...] = h                                      # lane-dense (H=128) store


def mlp_layer(x, params, *, layer_N, use_relu, tm=256):
    """Applies MLPLayer.forward to x of shape (..., input_dim)."""
    orig_shape = x.shape
    Din = orig_shape[-1]
    H = params["w1"].shape[1]

    # ---- lane-dense contraction dim: pad Din up to a multiple of 128 --------
    Din_pad = _round_up(Din, 128)

    x2d = x.reshape(-1, Din).astype(jnp.float32)
    N = x2d.shape[0]

    # ---- row-tile sizing -----------------------------------------------------
    Npad0 = _round_up(N, 8)
    if Npad0 <= tm:
        # Small problem: single grid step, everything resident in one pass.
        tm_eff = Npad0
        Npad = Npad0
    else:
        tm_eff = _round_up(tm, 8)
        Npad = _round_up(N, tm_eff)
        g = Npad // tm_eff
        if g > 1 and g % 2 == 1:
            # v7x: keep the parallel grid an even multiple of the 2 TensorCores.
            Npad += tm_eff

    # Pad rows to Npad and columns to Din_pad (zero cols contribute nothing),
    # then cast the streaming input to bf16 once in the wrapper.
    x2d = jnp.pad(x2d, ((0, Npad - N), (0, Din_pad - Din))).astype(jnp.bfloat16)

    # ---- weights: bf16 matmul operands, f32 biases ---------------------------
    w1 = jnp.pad(params["w1"].astype(jnp.float32),
                 ((0, Din_pad - Din), (0, 0))).astype(jnp.bfloat16)   # (Din_pad, H)
    wh = params["wh"].astype(jnp.bfloat16)                            # (layer_N, H, H)
    b1 = params["b1"].astype(jnp.float32)                             # (1, H)
    bh = params["bh"].astype(jnp.float32)                             # (layer_N, 1, H)

    kern = functools.partial(mlp_kernel, layer_N=layer_N, use_relu=use_relu)

    # ---- VMEM budget: 2x pipelined x/out tiles + 1x resident weights + slack.
    tile_bytes = tm_eff * Din_pad * 2 + tm_eff * H * 4           # x(bf16)+out(f32)
    weight_bytes = (w1.size + wh.size) * 2 + (b1.size + bh.size) * 4
    vmem_limit = int(min(max(2 * tile_bytes + weight_bytes + (8 << 20),
                             32 << 20),
                         48 << 20))   # stays under v7x's 64 MiB physical VMEM

    cost = pl.CostEstimate(
        flops=int(2 * Npad * (Din_pad * H + layer_N * H * H)),
        transcendentals=0 if use_relu else int(Npad * H * (1 + layer_N)),
        bytes_accessed=int(x2d.size * 2 + Npad * H * 4
                           + (w1.size + wh.size) * 2
                           + (b1.size + bh.size) * 4),
    )

    resident = pl.Buffered(1)   # weights: constant index_map, single-buffered

    out = pl.pallas_call(
        kern,
        out_shape=jax.ShapeDtypeStruct((Npad, H), jnp.float32),
        grid_spec=pltpu.PrefetchScalarGridSpec(
            num_scalar_prefetch=0,
            grid=(Npad // tm_eff,),
            in_specs=[
                pl.BlockSpec((tm_eff, Din_pad), lambda i: (i, 0)),         # x tile (bf16)
                pl.BlockSpec((Din_pad, H), lambda i: (0, 0),
                             pipeline_mode=resident),                      # W1 (bf16)
                pl.BlockSpec((1, H), lambda i: (0, 0),
                             pipeline_mode=resident),                      # b1 (f32)
                pl.BlockSpec((layer_N, H, H), lambda i: (0, 0, 0),
                             pipeline_mode=resident),                      # Wh (bf16)
                pl.BlockSpec((layer_N, 1, H), lambda i: (0, 0, 0),
                             pipeline_mode=resident),                      # bh (f32)
            ],
            out_specs=pl.BlockSpec((tm_eff, H), lambda i: (i, 0)),
        ),
        compiler_params=pltpu.CompilerParams(
            dimension_semantics=("parallel",),
            vmem_limit_bytes=vmem_limit,
        ),
        cost_estimate=cost,
    )(x2d, w1, b1, wh, bh)

    out = out[:N]                       # drop padded garbage rows (keep this!)
    return out.reshape(orig_shape[:-1] + (H,))


# ---------------- pure-JAX f32 reference (mirrors the PyTorch forward) --------
def reference_mlp(x, params, *, layer_N, use_relu):
    act = (lambda v: jnp.maximum(v, 0.0)) if use_relu else jnp.tanh
    h = act(x @ params["w1"] + params["b1"])
    for l in range(layer_N):
        h = act(h @ params["wh"][l] + params["bh"][l])
    return h


def make_params(key, input_dim, hidden, layer_N):
    k1, k2, k3, k4 = jax.random.split(key, 4)
    n = lambda k, shape, s: (s * jax.random.normal(k, shape)).astype(jnp.float32)
    return {
        "w1": n(k1, (input_dim, hidden), 0.1),
        "b1": n(k3, (1, hidden), 0.01),
        "wh": n(k2, (layer_N, hidden, hidden), 0.1),
        "bh": n(k4, (layer_N, 1, hidden), 0.01),
    }


if __name__ == "__main__":
    # Small but lane-dense shapes: hidden_size = 128 keeps the last dim a full
    # vreg lane width (unmasked stores, full MXU columns); Din=64 is zero-padded
    # to 128 inside the wrapper.
    B, T, input_dim, hidden, layer_N = 2, 25, 64, 128, 2

    key = jax.random.PRNGKey(0)
    kx, kp = jax.random.split(key)
    x = jax.random.normal(kx, (B, T, input_dim), dtype=jnp.float32)
    params = make_params(kp, input_dim, hidden, layer_N)

    for use_relu in (True, False):   # exercise both use_ReLU branches
        out = mlp_layer(x, params, layer_N=layer_N, use_relu=use_relu)
        out = jax.block_until_ready(out)
        ref = reference_mlp(x, params, layer_N=layer_N, use_relu=use_relu)
        # bf16 matmul operands (f32 accumulation) vs pure-f32 reference.
        np.testing.assert_allclose(np.asarray(out), np.asarray(ref),
                                   rtol=1e-2, atol=5e-2)

    print("KERNEL_OK")
</pallas_src>

<mosaic_0001>
module attributes {stable_mosaic.version = 11 : i64} {
  func.func @mlp_kernel(%arg0: i32, %arg1: memref<56x128xbf16, #tpu.memory_space<vmem>>, %arg2: memref<128x128xbf16, #tpu.memory_space<vmem>>, %arg3: memref<1x128xf32, #tpu.memory_space<vmem>>, %arg4: memref<2x128x128xbf16, #tpu.memory_space<vmem>>, %arg5: memref<2x1x128xf32, #tpu.memory_space<vmem>>, %arg6: memref<56x128xf32, #tpu.memory_space<vmem>>) attributes {dimension_semantics = [#tpu.dimension_semantics<parallel>], iteration_bounds = array<i64: 1>, scalar_prefetch = 0 : i64, scratch_operands = 0 : i64, tpu.core_type = #tpu.core_type<tc>, window_params = [{transform_indices = @transform_0, window_bounds = array<i64: 56, 128>}, {pipeline_mode = #tpu.pipeline_mode<synchronous>, transform_indices = @transform_1, window_bounds = array<i64: 128, 128>}, {pipeline_mode = #tpu.pipeline_mode<synchronous>, transform_indices = @transform_2, window_bounds = array<i64: 1, 128>}, {pipeline_mode = #tpu.pipeline_mode<synchronous>, transform_indices = @transform_3, window_bounds = array<i64: 2, 128, 128>}, {pipeline_mode = #tpu.pipeline_mode<synchronous>, transform_indices = @transform_4, window_bounds = array<i64: 2, 1, 128>}, {transform_indices = @transform_5, window_bounds = array<i64: 56, 128>}]} {
    %c0 = arith.constant 0 : index
    %c0_0 = arith.constant 0 : index
    %0 = vector.load %arg1[%c0, %c0_0] : memref<56x128xbf16, #tpu.memory_space<vmem>>, vector<56x128xbf16>
    %c0_1 = arith.constant 0 : index
    %c0_2 = arith.constant 0 : index
    %1 = vector.load %arg2[%c0_1, %c0_2] : memref<128x128xbf16, #tpu.memory_space<vmem>>, vector<128x128xbf16>
    %cst = arith.constant dense<0.000000e+00> : vector<56x128xf32>
    %2 = tpu.matmul %0, %1, %cst {dimension_numbers = #tpu.dot_dimension_numbers<[1], [0], [0], [1], [0, 0, 1, 1], [], []>} : vector<56x128xbf16>, vector<128x128xbf16>, vector<56x128xf32> -> vector<56x128xf32>
    %c0_3 = arith.constant 0 : index
    %c0_4 = arith.constant 0 : index
    %3 = vector.load %arg3[%c0_3, %c0_4] : memref<1x128xf32, #tpu.memory_space<vmem>>, vector<1x128xf32>
    %4 = vector.broadcast %3 : vector<1x128xf32> to vector<56x128xf32>
    %5 = arith.addf %2, %4 : vector<56x128xf32>
    %cst_5 = arith.constant 0.000000e+00 : f32
    %6 = vector.broadcast %cst_5 : f32 to vector<56x128xf32>
    %7 = arith.maximumf %5, %6 : vector<56x128xf32>
    %8 = arith.truncf %7 : vector<56x128xf32> to vector<56x128xbf16>
    %c0_6 = arith.constant 0 : index
    %c0_7 = arith.constant 0 : index
    %c0_8 = arith.constant 0 : index
    %9 = vector.load %arg4[%c0_6, %c0_7, %c0_8] : memref<2x128x128xbf16, #tpu.memory_space<vmem>>, vector<1x128x128xbf16>
    %10 = vector.shape_cast %9 : vector<1x128x128xbf16> to vector<128x128xbf16>
    %cst_9 = arith.constant dense<0.000000e+00> : vector<56x128xf32>
    %11 = tpu.matmul %8, %10, %cst_9 {dimension_numbers = #tpu.dot_dimension_numbers<[1], [0], [0], [1], [0, 0, 1, 1], [], []>} : vector<56x128xbf16>, vector<128x128xbf16>, vector<56x128xf32> -> vector<56x128xf32>
    %c0_10 = arith.constant 0 : index
    %c0_11 = arith.constant 0 : index
    %c0_12 = arith.constant 0 : index
    %12 = vector.load %arg5[%c0_10, %c0_11, %c0_12] : memref<2x1x128xf32, #tpu.memory_space<vmem>>, vector<1x1x128xf32>
    %13 = vector.shape_cast %12 : vector<1x1x128xf32> to vector<1x128xf32>
    %14 = vector.broadcast %13 : vector<1x128xf32> to vector<56x128xf32>
    %15 = arith.addf %11, %14 : vector<56x128xf32>
    %cst_13 = arith.constant 0.000000e+00 : f32
    %16 = vector.broadcast %cst_13 : f32 to vector<56x128xf32>
    %17 = arith.maximumf %15, %16 : vector<56x128xf32>
    %18 = arith.truncf %17 : vector<56x128xf32> to vector<56x128xbf16>
    %c1 = arith.constant 1 : index
    %c0_14 = arith.constant 0 : index
    %c0_15 = arith.constant 0 : index
    %19 = vector.load %arg4[%c1, %c0_14, %c0_15] : memref<2x128x128xbf16, #tpu.memory_space<vmem>>, vector<1x128x128xbf16>
    %20 = vector.shape_cast %19 : vector<1x128x128xbf16> to vector<128x128xbf16>
    %cst_16 = arith.constant dense<0.000000e+00> : vector<56x128xf32>
    %21 = tpu.matmul %18, %20, %cst_16 {dimension_numbers = #tpu.dot_dimension_numbers<[1], [0], [0], [1], [0, 0, 1, 1], [], []>} : vector<56x128xbf16>, vector<128x128xbf16>, vector<56x128xf32> -> vector<56x128xf32>
    %c1_17 = arith.constant 1 : index
    %c0_18 = arith.constant 0 : index
    %c0_19 = arith.constant 0 : index
    %22 = vector.load %arg5[%c1_17, %c0_18, %c0_19] : memref<2x1x128xf32, #tpu.memory_space<vmem>>, vector<1x1x128xf32>
    %23 = vector.shape_cast %22 : vector<1x1x128xf32> to vector<1x128xf32>
    %24 = vector.broadcast %23 : vector<1x128xf32> to vector<56x128xf32>
    %25 = arith.addf %21, %24 : vector<56x128xf32>
    %cst_20 = arith.constant 0.000000e+00 : f32
    %26 = vector.broadcast %cst_20 : f32 to vector<56x128xf32>
    %27 = arith.maximumf %25, %26 : vector<56x128xf32>
    %c0_21 = arith.constant 0 : index
    %c0_22 = arith.constant 0 : index
    %28 = vector.load %arg6[%c0_21, %c0_22] : memref<56x128xf32, #tpu.memory_space<vmem>>, vector<56x128xf32>
    tpu.vector_store %arg6[%c0_21, %c0_22], %27 {strides = array<i32>} : memref<56x128xf32, #tpu.memory_space<vmem>>, vector<56x128xf32>,
    return
  }
  func.func @transform_0(%arg0: i32) -> (i32, i32) {
    %c0_i32 = arith.constant 0 : i32
    %c0_i32_0 = arith.constant 0 : i32
    return %arg0, %c0_i32 : i32, i32
  }
  func.func @transform_1(%arg0: i32) -> (i32, i32) {
    %c0_i32 = arith.constant 0 : i32
    %c0_i32_0 = arith.constant 0 : i32
    %c0_i32_1 = arith.constant 0 : i32
    return %c0_i32, %c0_i32_0 : i32, i32
  }
  func.func @transform_2(%arg0: i32) -> (i32, i32) {
    %c0_i32 = arith.constant 0 : i32
    %c0_i32_0 = arith.constant 0 : i32
    %c0_i32_1 = arith.constant 0 : i32
    return %c0_i32, %c0_i32_0 : i32, i32
  }
  func.func @transform_3(%arg0: i32) -> (i32, i32, i32) {
    %c0_i32 = arith.constant 0 : i32
    %c0_i32_0 = arith.constant 0 : i32
    %c0_i32_1 = arith.constant 0 : i32
    %c0_i32_2 = arith.constant 0 : i32
    return %c0_i32, %c0_i32_0, %c0_i32_1 : i32, i32, i32
  }
  func.func @transform_4(%arg0: i32) -> (i32, i32, i32) {
    %c0_i32 = arith.constant 0 : i32
    %c0_i32_0 = arith.constant 0 : i32
    %c0_i32_1 = arith.constant 0 : i32
    %c0_i32_2 = arith.constant 0 : i32
    return %c0_i32, %c0_i32_0, %c0_i32_1 : i32, i32, i32
  }
  func.func @transform_5(%arg0: i32) -> (i32, i32) {
    %c0_i32 = arith.constant 0 : i32
    %c0_i32_0 = arith.constant 0 : i32
    return %arg0, %c0_i32 : i32, i32
  }
}

</mosaic_0001>

<bundles_post_ra>
// kernel: tpu_custom_call.1
= control target key start
LH: loop header
LB: loop body
LE: loop exit
PB: predicated region body
PF: predicated region fallthrough
CT: control target
= control target key end

     0   :  { %10 = vsyncpa [#allocation3], 0  ;;  %s950_s0 = inlined_call_operand.hbm [shape: bf16[56,128], index: 0, kind: input, shape index: {}]   ;;  %s951_s1 = inlined_call_operand.hbm [shape: bf16[128,128], index: 1, kind: input, shape index: {}]   ;;  %s952_s2 = inlined_call_operand.vmem [shape: f32[1,128], index: 2, kind: input, shape index: {}]   ;;  %s953_s3 = inlined_call_operand.hbm [shape: bf16[2,128,128], index: 3, kind: input, shape index: {}]   ;;  %s954_s4 = inlined_call_operand.vmem [shape: f32[2,1,128], index: 4, kind: input, shape index: {}]   ;;  %s955_s5 = inlined_call_operand.hbm [shape: f32[56,128], index: 5, kind: output, shape index: {}]  }
   0x1   :  { %11 = vsyncpa [#allocation6], 0 }
   0x2   :  { %12 = vsyncpa [#allocation4], 0  ;;  %s839_s18 = smov [#allocation5]   ;;  %s840_s20 = smov [#allocation2]  }
   0x3   :  { %s30_s19 = sshll.u32 %s839_s18, 4  ;;  %s18_s21 = sshll.u32 %s840_s20, 4  ;;  %s31_s19 = int_to_ptr.vmem [resolvable:$true] %s30_s19  ;;  %s877_s21 = int_to_ptr.vmem [resolvable:$true] %s18_s21 }
   0x4   :  { %s745_s24 = scalar_lea.hbm %s951_s1, 1024 }
   0x5   :  { %p746_p0 = scmp.ne.s32.totalorder %s951_s1, %s745_s24  ;;  %p749_p1 = scmp.lt.u32.totalorder %s745_s24, %s951_s1 }
   0x7   :  { %p751_p2 = pnand %p749_p1, %p746_p0 }
   0x9   :  { %754 = shalt.err (!%p751_p2)
}
   0xa   :  { %s755_s29 = scalar_lea.vmem %s31_s19, 1024  ;;  %p760_p4 = scmp.lt.s32.totalorder %s31_s19, %s31_s19 }
   0xb   :  { %p756_p3 = scmp.ne.s32.totalorder %s31_s19, %s755_s29  ;;  %p761_p5 = scmp.lt.s32.totalorder %s755_s29, %s755_s29 }
   0xd   :  { %p762_p6 = por %p761_p5, %p760_p4 }
   0xf   :  { %p763_p7 = pnand %p762_p6, %p756_p3 }
  0x11   :  { %766 = shalt.err (!%p763_p7)
}
  0x12   :  { %s841_s30 = smov 64   ;;  %s842_s6 = smov 4  }
  0x13   :  { %36 = dma.hbm_to_vmem [thread:$0]  %s951_s1, 1024, %s31_s19, [#allocation6], %s841_s30, %s841_s30, %s842_s6  }
  0x14   :  { %s767_s11 = scalar_lea.hbm %s950_s0, 448 }
  0x15   :  { %p768_p8 = scmp.ne.s32.totalorder %s950_s0, %s767_s11  ;;  %p771_p9 = scmp.lt.u32.totalorder %s767_s11, %s950_s0 }
  0x17   :  { %p773_p10 = pnand %p771_p9, %p768_p8 }
  0x19   :  { %776 = shalt.err (!%p773_p10)
}
  0x1a   :  { %s777_s16 = scalar_lea.vmem %s877_s21, 448  ;;  %p782_p12 = scmp.lt.s32.totalorder %s877_s21, %s877_s21 }
  0x1b   :  { %p778_p11 = scmp.ne.s32.totalorder %s877_s21, %s777_s16  ;;  %p783_p13 = scmp.lt.s32.totalorder %s777_s16, %s777_s16 }
  0x1d   :  { %p784_p0 = por %p783_p13, %p782_p12 }
  0x1f   :  { %p785_p1 = pnand %p784_p0, %p778_p11 }
  0x21   :  { %788 = shalt.err (!%p785_p1)
}
  0x22   :  { %24 = dma.hbm_to_vmem [thread:$0]  %s950_s0, 448, %s877_s21, [#allocation3], %s841_s30, %s841_s30, %s842_s6  }
  0x23   :  { %s843_s18 = smov [#allocation7]   ;;  %s789_s23 = scalar_lea.hbm %s953_s3, 2048 }
  0x24   :  { %s44_s19 = sshll.u32 %s843_s18, 4  ;;  %p790_p2 = scmp.ne.s32.totalorder %s953_s3, %s789_s23  ;;  %s45_s19 = int_to_ptr.vmem [resolvable:$true] %s44_s19 }
  0x25   :  { %p793_p3 = scmp.lt.u32.totalorder %s789_s23, %s953_s3 }
  0x27   :  { %p795_p4 = pnand %p793_p3, %p790_p2 }
  0x29   :  { %798 = shalt.err (!%p795_p4)
}
  0x2a   :  { %s799_s28 = scalar_lea.vmem %s45_s19, 2048  ;;  %p804_p6 = scmp.lt.s32.totalorder %s45_s19, %s45_s19 }
  0x2b   :  { %p800_p5 = scmp.ne.s32.totalorder %s45_s19, %s799_s28  ;;  %p805_p7 = scmp.lt.s32.totalorder %s799_s28, %s799_s28 }
  0x2d   :  { %p806_p8 = por %p805_p7, %p804_p6 }
  0x2f   :  { %p807_p9 = pnand %p806_p8, %p800_p5 }
  0x31   :  { %810 = shalt.err (!%p807_p9)
}
  0x32   :  { %50 = dma.hbm_to_vmem [thread:$0]  %s953_s3, 2048, %s45_s19, [#allocation6], %s841_s30, %s841_s30, %s842_s6  }
  0x33   :  { %833 = dma.done.wait [#allocation3], 448  }
  0x34   :  { %834 = vsyncadd [#allocation3], 4294966848 }
  0x35   :  { %835 = dma.done.wait [#allocation6], 3072  }
  0x36   :  { %836 = vsyncadd [#allocation6], 4294964224  ;;  %v717_v0 = vld [vmem:[#allocation5] sm:$0xff]   ;;  %v718_v1 = vld [vmem:[#allocation5 + $0x8] sm:$0xff]  }
  0x37   :  { %621 = vmatprep.subr.bf16.mxu0 %v717_v0  ;;  %v719_v2 = vld [vmem:[#allocation5 + $0x10] sm:$0xff]   ;;  %v720_v3 = vld [vmem:[#allocation5 + $0x18] sm:$0xff]   ;;  %v725_v4 = vld [vmem:[#allocation2] sm:$0xff]  }
  0x38   :  { %622 = vmatpush3.bf16.msra.mxu0 %v717_v0  ;;  %637 = vmatprep.mubr.bf16.mxu0 %v725_v4  ;;  %v721_v5 = vld [vmem:[#allocation5 + $0x20] sm:$0xff]   ;;  %v730_v7 = vld [vmem:[#allocation7 + $0x8] sm:$0xff]   ;;  %v731_v9 = vld [vmem:[#allocation7 + $0x10] sm:$0xff]  }
  0x39   :  { %623 = vmatprep.subr.bf16.mxu0 %v718_v1  ;;  %v729_v6 = vld [vmem:[#allocation7] sm:$0xff]   ;;  %v722_v8 = vld [vmem:[#allocation5 + $0x28] sm:$0xff]   ;;  %v723_v10 = vld [vmem:[#allocation5 + $0x30] sm:$0xff]  }
  0x3a   :  { %645 = vmatprep.subr.bf16.mxu1 %v729_v6  ;;  %v732_v11 = vld [vmem:[#allocation7 + $0x18] sm:$0xff]   ;;  %v733_v13 = vld [vmem:[#allocation7 + $0x20] sm:$0xff]   ;;  %v734_v14 = vld [vmem:[#allocation7 + $0x28] sm:$0xff]  }
  0x3b   :  { %646 = vmatpush3.bf16.msra.mxu1 %v729_v6  ;;  %v724_v12 = vld [vmem:[#allocation5 + $0x38] sm:$0xff]   ;;  %v726_v15 = vld [vmem:[#allocation2 + $0x8] sm:$0xff]   ;;  %v737_v20 = vld [vmem:[#allocation7 + $0x40] sm:$0xff]  }
  0x3c   :  { %624 = vmatpush3.bf16.msra.mxu0 %v718_v1  ;;  %647 = vmatprep.subr.bf16.mxu1 %v730_v7  ;;  %v727_v16 = vld [vmem:[#allocation2 + $0x10] sm:$0xff]   ;;  %v728_v17 = vld [vmem:[#allocation2 + $0x18] ss:$0 sps:$4 sm:$0xff]   ;;  %v738_v21 = vld [vmem:[#allocation7 + $0x48] sm:$0xff]  }
  0x3d   :  { %625 = vmatprep.subr.bf16.mxu0 %v719_v2  ;;  %v735_v18 = vld [vmem:[#allocation7 + $0x30] sm:$0xff]   ;;  %v736_v19 = vld [vmem:[#allocation7 + $0x38] sm:$0xff]   ;;  %v741_v24 = vld [vmem:[#allocation7 + $0x60] sm:$0xff]  }
  0x3e   :  { %v739_v22 = vld [vmem:[#allocation7 + $0x50] sm:$0xff]   ;;  %v740_v23 = vld [vmem:[#allocation7 + $0x58] sm:$0xff]   ;;  %v742_v25 = vld [vmem:[#allocation7 + $0x68] sm:$0xff]  }
  0x3f   :  { %648 = vmatpush3.bf16.msra.mxu1 %v730_v7  ;;  %v553_v26 = vld [vmem:[%s952_s2] ss:$0 sm:$0xff]  ;;  %v743_v53 = vld [vmem:[#allocation7 + $0x70] sm:$0xff]   ;;  %v744_v54 = vld [vmem:[#allocation7 + $0x78] sm:$0xff]  }
  0x40   :  { %626 = vmatpush3.bf16.msra.mxu0 %v719_v2  ;;  %649 = vmatprep.subr.bf16.mxu1 %v731_v9  ;;  %v566_v55 = vld [vmem:[%s954_s4] ss:$0 sm:$0xff] }
  0x41   :  { %627 = vmatprep.subr.bf16.mxu0 %v720_v3 }
  0x43   :  { %650 = vmatpush3.bf16.msra.mxu1 %v731_v9 }
  0x44   :  { %628 = vmatpush3.bf16.msra.mxu0 %v720_v3  ;;  %651 = vmatprep.subr.bf16.mxu1 %v732_v11 }
  0x45   :  { %629 = vmatprep.subr.bf16.mxu0 %v721_v5 }
  0x47   :  { %652 = vmatpush3.bf16.msra.mxu1 %v732_v11 }
  0x48   :  { %630 = vmatpush3.bf16.msra.mxu0 %v721_v5  ;;  %653 = vmatprep.subr.bf16.mxu1 %v733_v13 }
  0x49   :  { %631 = vmatprep.subr.bf16.mxu0 %v722_v8 }
  0x4b   :  { %654 = vmatpush3.bf16.msra.mxu1 %v733_v13 }
  0x4c   :  { %632 = vmatpush3.bf16.msra.mxu0 %v722_v8  ;;  %655 = vmatprep.subr.bf16.mxu1 %v734_v14 }
  0x4d   :  { %633 = vmatprep.subr.bf16.mxu0 %v723_v10 }
  0x4f   :  { %656 = vmatpush3.bf16.msra.mxu1 %v734_v14 }
  0x50   :  { %634 = vmatpush3.bf16.msra.mxu0 %v723_v10  ;;  %657 = vmatprep.subr.bf16.mxu1 %v735_v18 }
  0x51   :  { %635 = vmatprep.subr.bf16.mxu0 %v724_v12 }
  0x53   :  { %658 = vmatpush3.bf16.msra.mxu1 %v735_v18  ;;  %v576_v18 = vld [vmem:[%s954_s4 + $0x1] ss:$0 sm:$0xff]  ;;  %s844_s4 = smov [#allocation8]  }
  0x54   :  { %636 = vmatpush3.bf16.msra.mxu0 %v724_v12  ;;  %659 = vmatprep.subr.bf16.mxu1 %v736_v19  ;;  %s540_s8 = sshll.u32 %s844_s4, 4  ;;  %s541_s8 = int_to_ptr.vmem [resolvable:$true] %s540_s8 }
  0x55   :  { %669 = vmatprep.subr.bf16.mxu0 %v737_v20  ;;  %s811_s9 = scalar_lea.vmem %s541_s8, 896  ;;  %p816_p11 = scmp.lt.s32.totalorder %s541_s8, %s541_s8 }
  0x56   :  { %p812_p10 = scmp.ne.s32.totalorder %s541_s8, %s811_s9  ;;  %p817_p12 = scmp.lt.s32.totalorder %s811_s9, %s811_s9 }
  0x57   :  { %638 = vmatmul.mubr.bf16.vlgmr.msra.gmra.mrb[0].mxu0 %v726_v15  ;;  %660 = vmatpush3.bf16.msra.mxu1 %v736_v19 }
  0x58   :  { %641 = vmatprep.mubr.bf16.mxu0 %v727_v16  ;;  %693 = vmatprep.subr.bf16.mxu1 %v737_v20  ;;  %p818_p13 = por %p817_p12, %p816_p11 }
  0x59   :  { %670 = vmatpush3.bf16.msra.mxu0 %v737_v20 }
  0x5a   :  { %671 = vmatprep.subr.bf16.mxu0 %v738_v21  ;;  %p819_p0 = pnand %p818_p13, %p812_p10 }
  0x5d   :  { %672 = vmatpush3.bf16.msra.mxu0 %v738_v21 }
  0x5e   :  { %673 = vmatprep.subr.bf16.mxu0 %v739_v22 }
  0x5f   :  { %642 = vmatmul.mubr.bf16.gmra.mrb[4].mxu0 %v728_v17 }
  0x61   :  { %674 = vmatpush3.bf16.msra.mxu0 %v739_v22 }
  0x62   :  { %675 = vmatprep.subr.bf16.mxu0 %v740_v23 }
  0x65   :  { %676 = vmatpush3.bf16.msra.mxu0 %v740_v23 }
  0x66   :  { %677 = vmatprep.subr.bf16.mxu0 %v741_v24 }
  0x69   :  { %678 = vmatpush3.bf16.msra.mxu0 %v741_v24 }
  0x6a   :  { %679 = vmatprep.subr.bf16.mxu0 %v742_v25 }
  0x6d   :  { %680 = vmatpush3.bf16.msra.mxu0 %v742_v25 }
  0x6e   :  { %681 = vmatprep.subr.bf16.mxu0 %v743_v53 }
  0x71   :  { %682 = vmatpush3.bf16.msra.mxu0 %v743_v53 }
  0x72   :  { %683 = vmatprep.subr.bf16.mxu0 %v744_v54 }
  0x75   :  { %684 = vmatpush3.bf16.msra.mxu0 %v744_v54 }
 0x12a   :  { %v639_v27 = vpop.f32.mrb[0].mxu0 }
 0x12b   :  { %v206_v28 = vadd.f32 %v639_v27, %v553_v26  ;;  %v197_v29 = vpop.f32.mrb[1].mxu0 }
 0x12c   :  { %v198_v30 = vadd.f32 %v553_v26, %v197_v29  ;;  %v640_v31 = vpop.f32.mrb[2].mxu0 }
 0x12d   :  { %v209_v32 = vadd.f32 %v640_v31, %v553_v26  ;;  %v200_v33 = vpop.f32.mrb[3].mxu0  ;;  %v229_v35 = vmax.f32 %v206_v28, 0.0 }
 0x12e   :  { %v201_v34 = vadd.f32 %v553_v26, %v200_v33  ;;  %v227_v37 = vmax.f32 %v198_v30, 0.0 }
 0x12f   :  { %v230_v36 = vmax.f32 %v209_v32, 0.0 }
 0x130   :  { %v228_v38 = vmax.f32 %v201_v34, 0.0 }
 0x131   :  { %v235_v39 = vpack.c.bf16 %v230_v36, %v229_v35 }
 0x132   :  { %v643_v40 = vpop.f32.mrb[4].mxu0  ;;  %v234_v41 = vpack.c.bf16 %v228_v38, %v227_v37 }
 0x133   :  { %v222_v42 = vadd.f32 %v643_v40, %v553_v26  ;;  %v213_v43 = vpop.f32.mrb[5].mxu0 }
 0x134   :  { %v214_v44 = vadd.f32 %v553_v26, %v213_v43  ;;  %v644_v45 = vpop.f32.mrb[6].mxu0  ;;  %661 = vmatprep.mubr.bf16.mxu1 %v234_v41 }
 0x135   :  { %v216_v46 = vpop.f32.mrb[7].mxu0  ;;  %662 = vmatmul.mubr.bf16.vlgmr.msra.gmra.mrb[0].mxu1 %v235_v39  ;;  %v233_v48 = vmax.f32 %v222_v42, 0.0 }
 0x136   :  { %v217_v47 = vadd.f32 %v553_v26, %v216_v46  ;;  %701 = vmatpush3.bf16.msra.mxu1 %v737_v20  ;;  %v231_v49 = vmax.f32 %v214_v44, 0.0 }
 0x137   :  { %694 = vmatprep.subr.bf16.mxu1 %v738_v21  ;;  %v237_v52 = vpack.c.bf16 %v233_v48, %v233_v48 }
 0x138   :  { %v232_v50 = vmax.f32 %v217_v47, 0.0 }
 0x13a   :  { %v236_v51 = vpack.c.bf16 %v232_v50, %v231_v49  ;;  %702 = vmatpush3.bf16.msra.mxu1 %v738_v21 }
 0x13b   :  { %695 = vmatprep.subr.bf16.mxu1 %v739_v22 }
 0x13c   :  { %665 = vmatprep.mubr.bf16.mxu1 %v236_v51 }
 0x13d   :  { %666 = vmatmul.mubr.bf16.gmra.mrb[4].mxu1 %v237_v52 }
 0x13e   :  { %703 = vmatpush3.bf16.msra.mxu1 %v739_v22 }
 0x13f   :  { %696 = vmatprep.subr.bf16.mxu1 %v740_v23 }
 0x142   :  { %704 = vmatpush3.bf16.msra.mxu1 %v740_v23 }
 0x143   :  { %697 = vmatprep.subr.bf16.mxu1 %v741_v24 }
 0x146   :  { %705 = vmatpush3.bf16.msra.mxu1 %v741_v24 }
 0x147   :  { %698 = vmatprep.subr.bf16.mxu1 %v742_v25 }
 0x14a   :  { %706 = vmatpush3.bf16.msra.mxu1 %v742_v25 }
 0x14b   :  { %699 = vmatprep.subr.bf16.mxu1 %v743_v53 }
 0x14e   :  { %707 = vmatpush3.bf16.msra.mxu1 %v743_v53 }
 0x14f   :  { %700 = vmatprep.subr.bf16.mxu1 %v744_v54 }
 0x152   :  { %708 = vmatpush3.bf16.msra.mxu1 %v744_v54 }
 0x208   :  { %v663_v56 = vpop.f32.mrb[0].mxu1 }
 0x209   :  { %v352_v57 = vadd.f32 %v663_v56, %v566_v55  ;;  %v343_v58 = vpop.f32.mrb[1].mxu1 }
 0x20a   :  { %v344_v59 = vadd.f32 %v566_v55, %v343_v58  ;;  %v664_v60 = vpop.f32.mrb[2].mxu1 }
 0x20b   :  { %v355_v61 = vadd.f32 %v664_v60, %v566_v55  ;;  %v346_v62 = vpop.f32.mrb[3].mxu1  ;;  %v375_v0 = vmax.f32 %v352_v57, 0.0 }
 0x20c   :  { %v347_v63 = vadd.f32 %v566_v55, %v346_v62  ;;  %v373_v2 = vmax.f32 %v344_v59, 0.0 }
 0x20d   :  { %v376_v1 = vmax.f32 %v355_v61, 0.0 }
 0x20e   :  { %v374_v3 = vmax.f32 %v347_v63, 0.0 }
 0x20f   :  { %v381_v4 = vpack.c.bf16 %v376_v1, %v375_v0 }
 0x210   :  { %v380_v5 = vpack.c.bf16 %v374_v3, %v373_v2  ;;  %v667_v6 = vpop.f32.mrb[4].mxu1 }
 0x211   :  { %v368_v7 = vadd.f32 %v667_v6, %v566_v55  ;;  %v359_v8 = vpop.f32.mrb[5].mxu1 }
 0x212   :  { %v360_v9 = vadd.f32 %v566_v55, %v359_v8  ;;  %v668_v10 = vpop.f32.mrb[6].mxu1  ;;  %685 = vmatprep.mubr.bf16.mxu0 %v380_v5 }
 0x213   :  { %v362_v11 = vpop.f32.mrb[7].mxu1  ;;  %686 = vmatmul.mubr.bf16.vlgmr.msra.gmra.mrb[8].mxu0 %v381_v4  ;;  %v379_v13 = vmax.f32 %v368_v7, 0.0 }
 0x214   :  { %v363_v12 = vadd.f32 %v566_v55, %v362_v11  ;;  %v377_v14 = vmax.f32 %v360_v9, 0.0 }
 0x215   :  { %v383_v17 = vpack.c.bf16 %v379_v13, %v379_v13 }
 0x216   :  { %v378_v15 = vmax.f32 %v363_v12, 0.0 }
 0x218   :  { %v382_v16 = vpack.c.bf16 %v378_v15, %v377_v14 }
 0x21a   :  { %689 = vmatprep.mubr.bf16.mxu1 %v382_v16 }
 0x21b   :  { %690 = vmatmul.mubr.bf16.vlgmr.msra.gmra.mrb[8].mxu1 %v383_v17 }
 0x2e6   :  { %v687_v19 = vpop.f32.mrb[8].mxu0 }
 0x2e7   :  { %v500_v20 = vadd.f32 %v687_v19, %v576_v18  ;;  %v491_v21 = vpop.f32.mrb[9].mxu0 }
 0x2e8   :  { %v492_v22 = vadd.f32 %v576_v18, %v491_v21  ;;  %v688_v23 = vpop.f32.mrb[10].mxu0 }
 0x2e9   :  { %v523_v24 = vmax.f32 %v500_v20, 0.0  ;;  %v503_v25 = vadd.f32 %v688_v23, %v576_v18  ;;  %v494_v26 = vpop.f32.mrb[11].mxu0 }
 0x2ea   :  { %v521_v27 = vmax.f32 %v492_v22, 0.0  ;;  %v495_v28 = vadd.f32 %v576_v18, %v494_v26 }
 0x2eb   :  { %530 = vst [vmem:[#allocation8 + $0x10] sm:$0xff] %v523_v24  ;;  %v524_v29 = vmax.f32 %v503_v25, 0.0 }
 0x2ec   :  { %528 = vst [vmem:[#allocation8] sm:$0xff] %v521_v27  ;;  %v522_v30 = vmax.f32 %v495_v28, 0.0 }
 0x2ed   :  { %531 = vst [vmem:[#allocation8 + $0x18] sm:$0xff] %v524_v29 }
 0x2ee   :  { %529 = vst [vmem:[#allocation8 + $0x8] sm:$0xff] %v522_v30  ;;  %v691_v31 = vpop.f32.mrb[8].mxu1 }
 0x2ef   :  { %v516_v32 = vadd.f32 %v691_v31, %v576_v18  ;;  %v507_v33 = vpop.f32.mrb[9].mxu1 }
 0x2f0   :  { %v508_v34 = vadd.f32 %v576_v18, %v507_v33  ;;  %v692_v35 = vpop.f32.mrb[10].mxu1 }
 0x2f1   :  { %v527_v36 = vmax.f32 %v516_v32, 0.0  ;;  %v510_v37 = vpop.f32.mrb[11].mxu1 }
 0x2f2   :  { %v525_v38 = vmax.f32 %v508_v34, 0.0  ;;  %v511_v39 = vadd.f32 %v576_v18, %v510_v37 }
 0x2f3   :  { %534 = vst [vmem:[#allocation8 + $0x30] sm:$0xff] %v527_v36 }
 0x2f4   :  { %532 = vst [vmem:[#allocation8 + $0x20] sm:$0xff] %v525_v38  ;;  %v526_v40 = vmax.f32 %v511_v39, 0.0 }
 0x2f6   :  { %533 = vst [vmem:[#allocation8 + $0x28] sm:$0xff] %v526_v40 }
 0x2f7   :  { %822 = shalt.err (!%p819_p0)
}
 0x2f8   :  { %s823_s12 = scalar_lea.hbm %s955_s5, 896 }
 0x2f9   :  { %p824_p1 = scmp.ne.s32.totalorder %s955_s5, %s823_s12  ;;  %p827_p2 = scmp.lt.u32.totalorder %s823_s12, %s955_s5 }
 0x2fb   :  { %p829_p3 = pnand %p827_p2, %p824_p1 }
 0x2fd   :  { %832 = shalt.err (!%p829_p3)
}
 0x2fe   :  { %s845_s1 = smov 128   ;;  %s846_s17 = smov 8  }
 0x2ff   :  { %546 = dma.vmem_to_hbm [thread:$0]  %s541_s8, 896, %s955_s5, [#allocation4], %s845_s1, %s845_s1, %s846_s17  }
 0x300   :  { %837 = dma.done.wait [#allocation4], 896  }
 0x301   :  { %838 = vsyncadd [#allocation4], 4294966400 }
 0x302   :  { %550 = vsyncpa [#allocation3], 1 }
 0x303   :  { %551 = vsyncpa [#allocation6], 1 }
 0x304   :  { %552 = vsyncpa [#allocation4], 1 }

</bundles_post_ra>
